<compile_context>
chip_gen: v7x
topology: tpu7x:2x2x1
jax: 0.10.0
libtpu: 0.0.40
codegen_flags: <defaults>
</compile_context>

<pallas_src>
import math

import jax
import jax.numpy as jnp
from jax import lax
from jax.experimental import pallas as pl
from jax.experimental.pallas import tpu as pltpu


_DEFAULT_TILE_BYTES = 4 * 1024 * 1024      # input bytes per block for tiled passes
_LANE_CANDIDATES = (1024, 512, 256, 128)   # lane-dense widths (multiples of 128)

_VMEM_LIMIT_CACHE = None


def _vmem_limit_bytes():
    """Per-generation scoped-VMEM budget (~3/4 of physical, capped at 96 MiB)."""
    global _VMEM_LIMIT_CACHE
    if _VMEM_LIMIT_CACHE is None:
        cap = 64 * 1024 * 1024             # conservative default (v7x physical VMEM)
        try:
            info_cap = int(pltpu.get_tpu_info().vmem_capacity_bytes)
            if info_cap > 0:
                cap = info_cap
        except Exception:
            pass
        _VMEM_LIMIT_CACHE = int(min(cap * 3 // 4, 96 * 1024 * 1024))
    return _VMEM_LIMIT_CACHE


def _pick_tile_rows(rows, width, itemsize, budget_bytes):
    """Largest per-block row count: a multiple of 8, or the full row extent."""
    per_row = max(1, width * itemsize)
    t = max(8, budget_bytes // per_row)
    if t >= rows:
        return rows                        # single full-height block (always legal)
    return max(8, (t // 8) * 8)


# --------------------------------------------------------------------------
# Kernels
def _fused_norm_kernel(x_ref, o_ref):
    """Small-tensor fast path: one VMEM block, reduce + scale fused (1R + 1W)."""
    x = x_ref[...].astype(jnp.float32)
    lane_sum = jnp.sum(x * x, axis=0, keepdims=True)   # sublane reduce (VPU)
    ss = jnp.sum(lane_sum, axis=1, keepdims=True)      # single cross-lane reduce
    inv = 1.0 / jnp.sqrt(ss)
    o_ref[...] = (x * inv).astype(o_ref.dtype)         # multiply in f32, cast once


def _make_reduce_kernel(rows, tile_rows, lane_pc, ragged):
    """Pass 1: per-core partial sum of squares, accumulated in the output block."""
    def kernel(x_ref, psum_ref):
        t = pl.program_id(1)

        @pl.when(t == 0)
        def _init():
            psum_ref[...] = jnp.zeros_like(psum_ref)

        x = x_ref[...].astype(jnp.float32)
        sq = x * x
        if ragged:
            # Pallas does NOT zero out-of-bounds block reads: mask the rows of
            # the (static) ragged last tile before they enter the sum.
            row_id = t * tile_rows + lax.broadcasted_iota(
                jnp.int32, (tile_rows, lane_pc), 0)
            sq = jnp.where(row_id < rows, sq, 0.0)
        partial = jnp.sum(sq, axis=0, keepdims=True)    # (1, lane_pc)
        psum_ref[...] += partial[None]                  # (1, 1, lane_pc)
    return kernel


def _scale_kernel(inv_ref, x_ref, o_ref):
    """Pass 2: elementwise scale by the precomputed 1/||x||_F (SMEM scalar)."""
    inv = inv_ref[0, 0]                                  # f32 scalar
    o_ref[...] = (x_ref[...].astype(jnp.float32) * inv).astype(o_ref.dtype)


# --------------------------------------------------------------------------
# Wrapper
def frobenius_normalize(x, *, tile_budget_bytes=None, force_two_pass=False):
    """x / ||x||_F over ALL elements (matches torch.norm(x, 'fro'))."""
    orig_shape = x.shape
    orig_dtype = x.dtype
    n = math.prod(orig_shape)
    itemsize = jnp.dtype(orig_dtype).itemsize
    vmem_limit = _vmem_limit_bytes()
    tile_budget = tile_budget_bytes or _DEFAULT_TILE_BYTES

    # ---- lane-dense view: widest lane count dividing n -> free reshape ------
    lane = None
    for cand in _LANE_CANDIDATES:
        if n % cand == 0:
            lane = cand
            break

    flat = x.reshape(-1)
    if lane is None:
        # Rare ragged fallback (n not a multiple of 128): minimal pad + slice.
        # TODO(synk): handle the <128-element tail in-kernel to avoid this copy.
        lane = 128
        rows = -(-n // lane)
        flat = jnp.pad(flat, (0, rows * lane - n))       # zeros don't affect ||x||_F
        padded = True
    else:
        rows = n // lane
        padded = False
    x2d = flat.reshape(rows, lane)
    slab_n = rows * lane

    # ---- fused single-block fast path (1 read + 1 write) --------------------
    # Footprint estimate: input + output blocks plus ~2 full-size f32 temps.
    fused_footprint = slab_n * (2 * itemsize + 8)
    if not force_two_pass and fused_footprint <= int(0.85 * vmem_limit):
        out2d = pl.pallas_call(
            _fused_norm_kernel,
            out_shape=jax.ShapeDtypeStruct((rows, lane), orig_dtype),
            in_specs=[pl.BlockSpec((rows, lane), lambda: (0, 0))],
            out_specs=pl.BlockSpec((rows, lane), lambda: (0, 0)),
            compiler_params=pltpu.CompilerParams(vmem_limit_bytes=vmem_limit),
        )(x2d)
    else:
        # ---- pass 1: sum of squares, lane-split across TensorCores ----------
        nc = 2 if lane % 256 == 0 else 1       # keep per-core lane width >= 128
        lane_pc = lane // nc
        tr1 = _pick_tile_rows(rows, lane_pc, itemsize, tile_budget)
        grid_t = pl.cdiv(rows, tr1)
        ragged1 = (rows % tr1) != 0
        psums = pl.pallas_call(
            _make_reduce_kernel(rows, tr1, lane_pc, ragged1),
            out_shape=jax.ShapeDtypeStruct((nc, 1, lane_pc), jnp.float32),
            grid=(nc, grid_t),
            in_specs=[pl.BlockSpec((tr1, lane_pc), lambda c, t: (t, c))],
            out_specs=pl.BlockSpec((1, 1, lane_pc), lambda c, t: (c, 0, 0)),
            compiler_params=pltpu.CompilerParams(
                dimension_semantics=("parallel", "arbitrary"),
                vmem_limit_bytes=vmem_limit),
        )(x2d)
        # Tiny finalize (a few hundred f32 values) in plain JAX.
        inv = (1.0 / jnp.sqrt(jnp.sum(psums))).reshape(1, 1).astype(jnp.float32)

        # ---- pass 2: elementwise scale, parallel across cores ---------------
        tr2 = _pick_tile_rows(rows, lane, itemsize, tile_budget)
        grid2 = pl.cdiv(rows, tr2)
        x_spec = pl.BlockSpec((tr2, lane), lambda i: (i, 0))
        if grid2 >= 3 and hasattr(pl, "Buffered"):
            try:  # deeper input pipelining; skip silently if unsupported
                x_spec = pl.BlockSpec((tr2, lane), lambda i: (i, 0),
                                      pipeline_mode=pl.Buffered(3))
            except TypeError:
                pass
        out2d = pl.pallas_call(
            _scale_kernel,
            out_shape=jax.ShapeDtypeStruct((rows, lane), orig_dtype),
            grid=(grid2,),
            in_specs=[pl.BlockSpec(memory_space=pltpu.MemorySpace.SMEM), x_spec],
            out_specs=pl.BlockSpec((tr2, lane), lambda i: (i, 0)),
            compiler_params=pltpu.CompilerParams(
                dimension_semantics=("parallel",),
                vmem_limit_bytes=vmem_limit),
        )(inv, x2d)
        # TODO(synk): on single-TC chips (v5e/v6e) the two passes could be fused
        # into one two-phase pallas_call to save a launch + (1,1) round trip.

    out_flat = out2d.reshape(-1)
    if padded:
        out_flat = out_flat[:n]
    return out_flat.reshape(orig_shape)


# --------------------------------------------------------------------------
if __name__ == "__main__":
    key = jax.random.PRNGKey(0)
    k1, k2, k3 = jax.random.split(key, 3)

    def ref_fn(v):
        return v / jnp.sqrt(jnp.sum(v.astype(jnp.float32) ** 2))

    # 1) fused single-block fast path, zero-copy (n divisible by 1024).
    x1 = jax.random.normal(k1, (2, 4, 16, 16), dtype=jnp.float32)
    out1 = jax.block_until_ready(jax.jit(frobenius_normalize)(x1))
    assert out1.shape == x1.shape and out1.dtype == x1.dtype
    assert jnp.allclose(out1, ref_fn(x1), atol=1e-5, rtol=1e-5), "fused path mismatch"

    # 2) forced two-pass path (single full-height tile per core).
    out2 = jax.block_until_ready(
        jax.jit(lambda v: frobenius_normalize(v, force_two_pass=True))(x1))
    assert jnp.allclose(out2, ref_fn(x1), atol=1e-5, rtol=1e-5), "two-pass mismatch"

    # 3) two-pass path with multiple row tiles and a ragged (masked) last tile.
    x2 = jax.random.normal(k2, (4, 4, 16, 26), dtype=jnp.float32)   # n = 6656 = 13*512
    out3 = jax.block_until_ready(
        jax.jit(lambda v: frobenius_normalize(
            v, force_two_pass=True, tile_budget_bytes=8 * 256 * 4))(x2))
    assert jnp.allclose(out3, ref_fn(x2), atol=1e-5, rtol=1e-5), "ragged-tile mismatch"

    # 4) ragged-size fallback (n not a multiple of 128 -> minimal pad + slice).
    x3 = jax.random.normal(k3, (2, 3, 5, 7), dtype=jnp.float32)     # n = 210
    out4 = jax.block_until_ready(jax.jit(frobenius_normalize)(x3))
    assert jnp.allclose(out4, ref_fn(x3), atol=1e-5, rtol=1e-5), "pad-fallback mismatch"

    # Note: all-zero input yields inf/nan, identical to the PyTorch reference.
    print("KERNEL_OK")
</pallas_src>

<mosaic_0001>
module attributes {stable_mosaic.version = 11 : i64} {
  func.func @_fused_norm_kernel(%arg0: memref<2x1024xf32, #tpu.memory_space<vmem>>, %arg1: memref<2x1024xf32, #tpu.memory_space<vmem>>) attributes {dimension_semantics = [], scalar_prefetch = 0 : i64, scratch_operands = 0 : i64, tpu.core_type = #tpu.core_type<tc>} {
    %c0 = arith.constant 0 : index
    %c0_0 = arith.constant 0 : index
    %0 = vector.load %arg0[%c0, %c0_0] : memref<2x1024xf32, #tpu.memory_space<vmem>>, vector<2x1024xf32>
    %1 = arith.mulf %0, %0 : vector<2x1024xf32>
    %cst = arith.constant dense<0.000000e+00> : vector<1024xf32>
    %2 = vector.multi_reduction <add>, %1, %cst [0] : vector<2x1024xf32> to vector<1024xf32>
    %3 = vector.shape_cast %2 : vector<1024xf32> to vector<1x1024xf32>
    %cst_1 = arith.constant dense<0.000000e+00> : vector<1xf32>
    %4 = vector.multi_reduction <add>, %3, %cst_1 [1] : vector<1x1024xf32> to vector<1xf32>
    %5 = vector.shape_cast %4 : vector<1xf32> to vector<1x1xf32>
    %6 = math.sqrt %5 : vector<1x1xf32>
    %cst_2 = arith.constant 1.000000e+00 : f32
    %7 = vector.broadcast %cst_2 : f32 to vector<1x1xf32>
    %8 = arith.divf %7, %6 : vector<1x1xf32>
    %9 = vector.broadcast %8 : vector<1x1xf32> to vector<2x1024xf32>
    %10 = arith.mulf %0, %9 : vector<2x1024xf32>
    %c0_3 = arith.constant 0 : index
    %c0_4 = arith.constant 0 : index
    %11 = vector.load %arg1[%c0_3, %c0_4] : memref<2x1024xf32, #tpu.memory_space<vmem>>, vector<2x1024xf32>
    tpu.vector_store %arg1[%c0_3, %c0_4], %10 {strides = array<i32>} : memref<2x1024xf32, #tpu.memory_space<vmem>>, vector<2x1024xf32>,
    return
  }
}

</mosaic_0001>

<bundles_post_ra>
// kernel: frobenius_normalize.1
= control target key start
LH: loop header
LB: loop body
LE: loop exit
PB: predicated region body
PF: predicated region fallthrough
CT: control target
= control target key end

     0   :  { %v18_v0 = vlaneseq  ;;  %v144_v3 = vmov 1983009808   ;;  %vm56_vm0 = vcmask 1041408   ;;  %s185_s0 = inlined_call_operand.vmem [shape: f32[2,1024], index: 0, kind: input, shape index: {}]   ;;  %s186_s1 = inlined_call_operand.vmem [shape: f32[2,1024], index: 1, kind: output, shape index: {}]  }
   0x1   :  { %v158_v1 = vld [vmem:[%s185_s0] sm:$0xff]  ;;  %v163_v2 = vld [vmem:[%s185_s0 + $0x8] sm:$0xff]  ;;  %v16_v4 = vunpack.c.l.s4 %v144_v3 }
   0x2   :  { %v10_v5 = vmul.f32 %v158_v1, %v158_v1  ;;  %v11_v6 = vmul.f32 %v163_v2, %v163_v2  ;;  %v19_v7 = vshrl.u32 %v18_v0, 7 }
   0x3   :  { %v17_v8 = vunpack.c.0.s8 %v16_v4 }
   0x4   :  { %v14_v9 = vcombine.high %v10_v5, %v10_v5  ;;  %v31_v10 = vcombine.high %v11_v6, %v11_v6 }
   0x5   :  { %v20_v11 = vsub.s32 %v17_v8, %v19_v7 }
   0x7   :  { %v21_v12 = vrot.slane %v10_v5, %v20_v11  ;;  %v28_v13 = vrot.slane %v14_v9, %v20_v11  ;;  %v38_v14 = vrot.slane %v11_v6, %v20_v11  ;;  %v45_v15 = vrot.slane %v31_v10, %v20_v11 }
   0x9   :  { %v29_v16 = vcombine.high %v21_v12, %v21_v12  ;;  %v30_v17 = vcombine.high %v28_v13, %v28_v13  ;;  %v46_v18 = vcombine.high %v38_v14, %v38_v14  ;;  %v47_v19 = vcombine.high %v45_v15, %v45_v15 }
   0xa   :  { %v57_v20 = vsel %vm56_vm0, %v21_v12, 0.0  ;;  %v71_v21 = vsel %vm56_vm0, %v28_v13, 0.0  ;;  %v85_v22 = vsel %vm56_vm0, %v38_v14, 0.0  ;;  %v99_v23 = vsel %vm56_vm0, %v45_v15, 0.0 }
   0xb   :  { %v58_v24 = vrot.slane %v57_v20, 4  ;;  %v64_v25 = vsel %vm56_vm0, %v29_v16, 0.0  ;;  %v72_v26 = vrot.slane %v71_v21, 4  ;;  %v78_v27 = vsel %vm56_vm0, %v30_v17, 0.0 }
   0xc   :  { %v65_v28 = vrot.slane %v64_v25, 4  ;;  %v79_v29 = vrot.slane %v78_v27, 4  ;;  %v86_v30 = vrot.slane %v85_v22, 4  ;;  %v92_v31 = vsel %vm56_vm0, %v46_v18, 0.0 }
   0xd   :  { %v59_v32 = vadd.f32 %v58_v24, %v57_v20  ;;  %v73_v33 = vadd.f32 %v72_v26, %v71_v21  ;;  %v93_v34 = vrot.slane %v92_v31, 4  ;;  %v100_v35 = vrot.slane %v99_v23, 4 }
   0xe   :  { %v66_v36 = vadd.f32 %v65_v28, %v64_v25  ;;  %v80_v37 = vadd.f32 %v79_v29, %v78_v27  ;;  %v87_v38 = vadd.f32 %v86_v30, %v85_v22  ;;  %v106_v39 = vsel %vm56_vm0, %v47_v19, 0.0 }
   0xf   :  { %v60_v40 = vrot.slane %v59_v32, 2  ;;  %v74_v41 = vrot.slane %v73_v33, 2  ;;  %v94_v42 = vadd.f32 %v93_v34, %v92_v31  ;;  %v101_v43 = vadd.f32 %v100_v35, %v99_v23 }
  0x10   :  { %v67_v44 = vrot.slane %v66_v36, 2  ;;  %v81_v45 = vrot.slane %v80_v37, 2  ;;  %v88_v46 = vrot.slane %v87_v38, 2  ;;  %v107_v47 = vrot.slane %v106_v39, 4 }
  0x11   :  { %v61_v48 = vadd.f32 %v60_v40, %v59_v32  ;;  %v75_v49 = vadd.f32 %v74_v41, %v73_v33  ;;  %v95_v50 = vrot.slane %v94_v42, 2  ;;  %v102_v51 = vrot.slane %v101_v43, 2 }
  0x12   :  { %v68_v52 = vadd.f32 %v67_v44, %v66_v36  ;;  %v82_v53 = vadd.f32 %v81_v45, %v80_v37  ;;  %v89_v54 = vadd.f32 %v88_v46, %v87_v38  ;;  %v108_v55 = vadd.f32 %v107_v47, %v106_v39 }
  0x13   :  { %v62_v56 = vrot.slane %v61_v48, 1  ;;  %v76_v57 = vrot.slane %v75_v49, 1  ;;  %v96_v60 = vadd.f32 %v95_v50, %v94_v42  ;;  %v103_v4 = vadd.f32 %v102_v51, %v101_v43 }
  0x14   :  { %v69_v58 = vrot.slane %v68_v52, 1  ;;  %v83_v59 = vrot.slane %v82_v53, 1  ;;  %v109_v61 = vrot.slane %v108_v55, 2  ;;  %v90_v3 = vrot.slane %v89_v54, 1 }
  0x15   :  { %v63_v62 = vadd.f32 %v62_v56, %v61_v48  ;;  %v77_v0 = vadd.f32 %v76_v57, %v75_v49  ;;  %v97_v6 = vrot.slane %v96_v60, 1  ;;  %v104_v10 = vrot.slane %v103_v4, 1 }
  0x16   :  { %v70_v63 = vadd.f32 %v69_v58, %v68_v52  ;;  %v84_v5 = vadd.f32 %v83_v59, %v82_v53  ;;  %v110_v7 = vadd.f32 %v109_v61, %v108_v55  ;;  %v91_v9 = vadd.f32 %v90_v3, %v89_v54 }
  0x17   :  { %v98_v12 = vadd.f32 %v97_v6, %v96_v60  ;;  %v105_v15 = vadd.f32 %v104_v10, %v103_v4 }
  0x18   :  { %v113_v8 = vadd.f32 %v70_v63, %v63_v62  ;;  %v111_v13 = vrot.slane %v110_v7, 1 }
  0x1a   :  { %v114_v11 = vadd.f32 %v113_v8, %v77_v0  ;;  %v112_v17 = vadd.f32 %v111_v13, %v110_v7 }
  0x1c   :  { %v115_v14 = vadd.f32 %v114_v11, %v84_v5 }
  0x1e   :  { %v116_v16 = vadd.f32 %v115_v14, %v91_v9 }
  0x20   :  { %v117_v18 = vadd.f32 %v116_v16, %v98_v12 }
  0x22   :  { %v118_v19 = vadd.f32 %v117_v18, %v105_v15 }
  0x24   :  { %v119_v20 = vadd.f32 %v118_v19, %v112_v17 }
  0x26   :  { %120 = vadd.xlane.f32.xlu0 %v119_v20 }
  0xb3   :  { %v121_v21 = vpop.xlane.xlu0 %120 }
  0xb4   :  { %140 = vrsqrt.f32 %v121_v21  ;;  %vm124_vm1 = vcmp.eq.f32.partialorder %v121_v21, inf  ;;  %v127_v24 = vand.u32 2147483648, %v121_v21  ;;  %vm126_vm2 = vcmp.eq.f32.partialorder %v121_v21, 0.0 }
  0xbe   :  { %v141_v22 = vpop.eup %140 }
  0xbf   :  { %v123_v23 = vmul.f32 %v141_v22, %v121_v21 }
  0xc1   :  { %v125_v25 = vsel %vm124_vm1, %v121_v21, %v123_v23 }
  0xc2   :  { %v128_v26 = vsel %vm126_vm2, %v127_v24, %v125_v25 }
  0xc3   :  { %142 = vrcp.f32 %v128_v26 }
  0xcd   :  { %v143_v27 = vpop.eup %142 }
  0xce   :  { %v131_v28 = vmul.f32 %v143_v27, %v158_v1  ;;  %v132_v29 = vmul.f32 %v143_v27, %v163_v2 }
  0xd0   :  { %133 = vst [vmem:[%s186_s1] sm:$0xff] %v131_v28  ;;  %134 = vst [vmem:[%s186_s1 + $0x8] sm:$0xff] %v132_v29 }

</bundles_post_ra>
